<compile_context>
chip_gen: v6e
topology: v6e:2x2x1
jax: 0.10.0
libtpu: 0.0.40
codegen_flags: <defaults>
</compile_context>

<pallas_src>
import functools

import jax
import jax.numpy as jnp
from jax.experimental import pallas as pl
from jax.experimental.pallas import tpu as pltpu


def _combined_loss_kernel(logits_ref, target_ref,
                          ce_out_ref, num_out_ref, den_out_ref,
                          ce_acc, num_acc, den_acc):
    j = pl.program_id(1)

    @pl.when(j == 0)
    def _():
        ce_acc[...] = jnp.zeros_like(ce_acc)
        num_acc[...] = jnp.zeros_like(num_acc)
        den_acc[...] = jnp.zeros_like(den_acc)

    logits = logits_ref[...].astype(jnp.float32)        # (1, C, T)  pixels on lanes
    tgt = target_ref[...]                                # (1, 1, T)  int32

    # ---- log-softmax over the class axis (sublanes): cheap C-way reduces ----
    cmax = jnp.max(logits, axis=1, keepdims=True)        # (1, 1, T)
    shifted = logits - cmax
    expz = jnp.exp(shifted)                              # (1, C, T)
    sumexp = jnp.sum(expz, axis=1, keepdims=True)        # (1, 1, T)
    lse = cmax + jnp.log(sumexp)                         # (1, 1, T)

    classes = jax.lax.broadcasted_iota(jnp.int32, logits.shape, 1)  # (1, C, T)
    onehot = (classes == tgt).astype(jnp.float32)        # (1, C, T)

    # ---- cross-entropy per pixel: lse - logit[target]; lane-dense accumulate ----
    logit_t = jnp.sum(logits * onehot, axis=1, keepdims=True)   # (1, 1, T)
    ce_acc[...] += lse - logit_t

    # ---- dice terms on exp(softmax(logits)) -- faithfully matches output.exp()
    #      in the reference DiceLoss (intentional replication of the PyTorch code).
    # One reciprocal per pixel instead of C divides per pixel.
    # (approx=True would move this fully to the EUP at ~1e-4 relative error; kept
    #  exact here to preserve tight agreement with the f32 reference.)
    inv = pl.reciprocal(sumexp, approx=False)            # (1, 1, T)
    soft = expz * inv                                    # softmax, (1, C, T)
    dice_out = jnp.exp(soft)
    num_acc[...] += dice_out * onehot                    # elementwise, lane-dense
    den_acc[...] += dice_out + onehot                    # elementwise, lane-dense

    # ---- finalize once per batch element: collapse lanes, emit tiny partials ----
    @pl.when(j == pl.num_programs(1) - 1)
    def _():
        ce_out_ref[...] = jnp.sum(ce_acc[...], axis=-1, keepdims=True)    # (1, 1, 1)
        num_out_ref[...] = jnp.sum(num_acc[...], axis=-1, keepdims=True)  # (1, C, 1)
        den_out_ref[...] = jnp.sum(den_acc[...], axis=-1, keepdims=True)  # (1, C, 1)


def _pick_tile(hw, max_tile):
    """Pick a lane-dense pixel tile: full row if it fits, else a /128 divisor."""
    if hw <= max_tile:
        return hw
    t = (max_tile // 128) * 128
    while t >= 128:
        if hw % t == 0:
            return t
        t -= 128
    # TODO(synk): pad + mask the tail tile for HW with no multiple-of-128 divisor.
    return hw


def combined_loss(logits_nchw, target_nhw, weight=1.0, *, max_tile=2048):
    """Pallas implementation of CombinedLoss.forward (returns a scalar)."""
    n, c, h, w = logits_nchw.shape
    hw = h * w
    m = n * hw

    # Free reshapes only -- no host-side transpose, no extra HBM pass.
    logits3d = logits_nchw.reshape(n, c, hw)
    target3d = target_nhw.reshape(n, 1, hw).astype(jnp.int32)

    t = _pick_tile(hw, max_tile)
    assert hw % t == 0, "pixel count must be tileable (pad inputs otherwise)"
    grid = (n, hw // t)

    ce_p, num_p, den_p = pl.pallas_call(
        _combined_loss_kernel,
        out_shape=(
            jax.ShapeDtypeStruct((n, 1, 1), jnp.float32),   # per-batch CE sum
            jax.ShapeDtypeStruct((n, c, 1), jnp.float32),   # per-batch dice numerators
            jax.ShapeDtypeStruct((n, c, 1), jnp.float32),   # per-batch dice denominators
        ),
        grid=grid,
        in_specs=[
            pl.BlockSpec((1, c, t), lambda i, j: (i, 0, j)),
            pl.BlockSpec((1, 1, t), lambda i, j: (i, 0, j)),
        ],
        out_specs=(
            pl.BlockSpec((1, 1, 1), lambda i, j: (i, 0, 0)),
            pl.BlockSpec((1, c, 1), lambda i, j: (i, 0, 0)),
            pl.BlockSpec((1, c, 1), lambda i, j: (i, 0, 0)),
        ),
        scratch_shapes=[
            pltpu.VMEM((1, 1, t), jnp.float32),   # CE partials (lane-dense)
            pltpu.VMEM((1, c, t), jnp.float32),   # dice numerator partials
            pltpu.VMEM((1, c, t), jnp.float32),   # dice denominator partials
        ],
        compiler_params=pltpu.CompilerParams(
            dimension_semantics=("parallel", "arbitrary")),
    )(logits3d, target3d)

    # Tiny final combine on O(N*C) scalars; weight baked in here (no SMEM input).
    eps = jnp.float32(0.0001)
    ce = jnp.sum(ce_p) * (jnp.float32(weight) / jnp.float32(m))
    numerator = 2.0 * jnp.sum(num_p, axis=0)[:, 0]          # (C,)
    denominator = jnp.sum(den_p, axis=0)[:, 0] + eps        # (C,)
    dice = jnp.sum(1.0 - numerator / denominator) / jnp.float32(c)
    return ce + dice


def _reference_combined_loss(logits_nchw, target_nhw, weight=1.0):
    """Pure-JAX reference mirroring the PyTorch module semantics."""
    n, c, h, w = logits_nchw.shape
    x = logits_nchw.astype(jnp.float32)
    onehot = jax.nn.one_hot(target_nhw, c, axis=1, dtype=jnp.float32)  # N,C,H,W
    logp = jax.nn.log_softmax(x, axis=1)
    ce = -jnp.sum(logp * onehot, axis=1)                               # N,H,W
    y1 = jnp.mean(ce) * weight
    soft = jax.nn.softmax(x, axis=1)
    out = jnp.exp(soft)                                                # output.exp()
    numerator = 2.0 * jnp.sum(out * onehot, axis=(0, 2, 3))
    denominator = jnp.sum(out + onehot, axis=(0, 2, 3)) + 0.0001
    y2 = jnp.sum(1.0 - numerator / denominator) / c
    return y1 + y2


if __name__ == "__main__":
    key = jax.random.PRNGKey(0)
    k1, k2 = jax.random.split(key)

    N, C, H, W = 2, 4, 16, 16
    logits = jax.random.normal(k1, (N, C, H, W), dtype=jnp.float32)
    target = jax.random.randint(k2, (N, H, W), 0, C, dtype=jnp.int32)
    weight = 1.0

    loss = combined_loss(logits, target, weight)
    loss = jax.block_until_ready(loss)

    ref = _reference_combined_loss(logits, target, weight)
    assert jnp.allclose(loss, ref, rtol=1e-5, atol=1e-5), (loss, ref)

    print("KERNEL_OK")
</pallas_src>

<mosaic_0001>
module attributes {stable_mosaic.version = 11 : i64} {
  func.func @_combined_loss_kernel(%arg0: i32, %arg1: i32, %arg2: memref<1x4x256xf32, #tpu.memory_space<vmem>>, %arg3: memref<1x1x256xi32, #tpu.memory_space<vmem>>, %arg4: memref<1x1x1xf32, #tpu.memory_space<vmem>>, %arg5: memref<1x4x1xf32, #tpu.memory_space<vmem>>, %arg6: memref<1x4x1xf32, #tpu.memory_space<vmem>>, %arg7: memref<1x1x256xf32, #tpu.memory_space<vmem>>, %arg8: memref<1x4x256xf32, #tpu.memory_space<vmem>>, %arg9: memref<1x4x256xf32, #tpu.memory_space<vmem>>) attributes {dimension_semantics = [#tpu.dimension_semantics<parallel>, #tpu.dimension_semantics<arbitrary>], iteration_bounds = array<i64: 2, 1>, scalar_prefetch = 0 : i64, scratch_operands = 3 : i64, tpu.core_type = #tpu.core_type<tc>, window_params = [{transform_indices = @transform_0, window_bounds = array<i64: 1, 4, 256>}, {transform_indices = @transform_1, window_bounds = array<i64: 1, 1, 256>}, {transform_indices = @transform_2, window_bounds = array<i64: 1, 1, 1>}, {transform_indices = @transform_3, window_bounds = array<i64: 1, 4, 1>}, {transform_indices = @transform_4, window_bounds = array<i64: 1, 4, 1>}]} {
    %c0_i32 = arith.constant 0 : i32
    %0 = arith.cmpi eq, %arg1, %c0_i32 : i32
    %1 = arith.extui %0 : i1 to i32
    %c0_i32_0 = arith.constant 0 : i32
    %2 = arith.cmpi ne, %1, %c0_i32_0 : i32
    scf.if %2 {
      %cst_28 = arith.constant 0.000000e+00 : f32
      %41 = vector.broadcast %cst_28 : f32 to vector<1x1x256xf32>
      %c0_29 = arith.constant 0 : index
      %c0_30 = arith.constant 0 : index
      %c0_31 = arith.constant 0 : index
      %42 = vector.load %arg7[%c0_29, %c0_30, %c0_31] : memref<1x1x256xf32, #tpu.memory_space<vmem>>, vector<1x1x256xf32>
      tpu.vector_store %arg7[%c0_29, %c0_30, %c0_31], %41 {strides = array<i32>} : memref<1x1x256xf32, #tpu.memory_space<vmem>>, vector<1x1x256xf32>,
      %cst_32 = arith.constant 0.000000e+00 : f32
      %43 = vector.broadcast %cst_32 : f32 to vector<1x4x256xf32>
      %c0_33 = arith.constant 0 : index
      %c0_34 = arith.constant 0 : index
      %c0_35 = arith.constant 0 : index
      %44 = vector.load %arg8[%c0_33, %c0_34, %c0_35] : memref<1x4x256xf32, #tpu.memory_space<vmem>>, vector<1x4x256xf32>
      tpu.vector_store %arg8[%c0_33, %c0_34, %c0_35], %43 {strides = array<i32>} : memref<1x4x256xf32, #tpu.memory_space<vmem>>, vector<1x4x256xf32>,
      %cst_36 = arith.constant 0.000000e+00 : f32
      %45 = vector.broadcast %cst_36 : f32 to vector<1x4x256xf32>
      %c0_37 = arith.constant 0 : index
      %c0_38 = arith.constant 0 : index
      %c0_39 = arith.constant 0 : index
      %46 = vector.load %arg9[%c0_37, %c0_38, %c0_39] : memref<1x4x256xf32, #tpu.memory_space<vmem>>, vector<1x4x256xf32>
      tpu.vector_store %arg9[%c0_37, %c0_38, %c0_39], %45 {strides = array<i32>} : memref<1x4x256xf32, #tpu.memory_space<vmem>>, vector<1x4x256xf32>,
    } else {
    }
    %c0 = arith.constant 0 : index
    %c0_1 = arith.constant 0 : index
    %c0_2 = arith.constant 0 : index
    %3 = vector.load %arg2[%c0, %c0_1, %c0_2] : memref<1x4x256xf32, #tpu.memory_space<vmem>>, vector<1x4x256xf32>
    %c0_3 = arith.constant 0 : index
    %c0_4 = arith.constant 0 : index
    %c0_5 = arith.constant 0 : index
    %4 = vector.load %arg3[%c0_3, %c0_4, %c0_5] : memref<1x1x256xi32, #tpu.memory_space<vmem>>, vector<1x1x256xi32>
    %cst = arith.constant dense<0xFF800000> : vector<1x256xf32>
    %5 = vector.multi_reduction <maximumf>, %3, %cst [1] : vector<1x4x256xf32> to vector<1x256xf32>
    %6 = vector.shape_cast %5 : vector<1x256xf32> to vector<1x1x256xf32>
    %7 = vector.broadcast %6 : vector<1x1x256xf32> to vector<1x4x256xf32>
    %8 = arith.subf %3, %7 : vector<1x4x256xf32>
    %9 = math.exp %8 : vector<1x4x256xf32>
    %cst_6 = arith.constant dense<0.000000e+00> : vector<1x256xf32>
    %10 = vector.multi_reduction <add>, %9, %cst_6 [1] : vector<1x4x256xf32> to vector<1x256xf32>
    %11 = vector.shape_cast %10 : vector<1x256xf32> to vector<1x1x256xf32>
    %12 = math.log %11 : vector<1x1x256xf32>
    %13 = arith.addf %6, %12 : vector<1x1x256xf32>
    %14 = tpu.iota {dimensions = array<i32: 1>} : vector<1x4x256xi32>
    %15 = vector.broadcast %4 : vector<1x1x256xi32> to vector<1x4x256xi32>
    %16 = arith.cmpi eq, %14, %15 : vector<1x4x256xi32>
    %17 = arith.extui %16 : vector<1x4x256xi1> to vector<1x4x256xi32>
    %18 = arith.sitofp %17 : vector<1x4x256xi32> to vector<1x4x256xf32>
    %19 = arith.mulf %3, %18 : vector<1x4x256xf32>
    %cst_7 = arith.constant dense<0.000000e+00> : vector<1x256xf32>
    %20 = vector.multi_reduction <add>, %19, %cst_7 [1] : vector<1x4x256xf32> to vector<1x256xf32>
    %21 = vector.shape_cast %20 : vector<1x256xf32> to vector<1x1x256xf32>
    %c0_8 = arith.constant 0 : index
    %c0_9 = arith.constant 0 : index
    %c0_10 = arith.constant 0 : index
    %22 = vector.load %arg7[%c0_8, %c0_9, %c0_10] : memref<1x1x256xf32, #tpu.memory_space<vmem>>, vector<1x1x256xf32>
    %23 = arith.subf %13, %21 : vector<1x1x256xf32>
    %24 = arith.addf %22, %23 : vector<1x1x256xf32>
    %c0_11 = arith.constant 0 : index
    %c0_12 = arith.constant 0 : index
    %c0_13 = arith.constant 0 : index
    %25 = vector.load %arg7[%c0_11, %c0_12, %c0_13] : memref<1x1x256xf32, #tpu.memory_space<vmem>>, vector<1x1x256xf32>
    tpu.vector_store %arg7[%c0_11, %c0_12, %c0_13], %24 {strides = array<i32>} : memref<1x1x256xf32, #tpu.memory_space<vmem>>, vector<1x1x256xf32>,
    %26 = tpu.reciprocal %11 : vector<1x1x256xf32> -> vector<1x1x256xf32>
    %27 = vector.broadcast %26 : vector<1x1x256xf32> to vector<1x4x256xf32>
    %28 = arith.mulf %9, %27 : vector<1x4x256xf32>
    %29 = math.exp %28 : vector<1x4x256xf32>
    %c0_14 = arith.constant 0 : index
    %c0_15 = arith.constant 0 : index
    %c0_16 = arith.constant 0 : index
    %30 = vector.load %arg8[%c0_14, %c0_15, %c0_16] : memref<1x4x256xf32, #tpu.memory_space<vmem>>, vector<1x4x256xf32>
    %31 = arith.mulf %29, %18 : vector<1x4x256xf32>
    %32 = arith.addf %30, %31 : vector<1x4x256xf32>
    %c0_17 = arith.constant 0 : index
    %c0_18 = arith.constant 0 : index
    %c0_19 = arith.constant 0 : index
    %33 = vector.load %arg8[%c0_17, %c0_18, %c0_19] : memref<1x4x256xf32, #tpu.memory_space<vmem>>, vector<1x4x256xf32>
    tpu.vector_store %arg8[%c0_17, %c0_18, %c0_19], %32 {strides = array<i32>} : memref<1x4x256xf32, #tpu.memory_space<vmem>>, vector<1x4x256xf32>,
    %c0_20 = arith.constant 0 : index
    %c0_21 = arith.constant 0 : index
    %c0_22 = arith.constant 0 : index
    %34 = vector.load %arg9[%c0_20, %c0_21, %c0_22] : memref<1x4x256xf32, #tpu.memory_space<vmem>>, vector<1x4x256xf32>
    %35 = arith.addf %29, %18 : vector<1x4x256xf32>
    %36 = arith.addf %34, %35 : vector<1x4x256xf32>
    %c0_23 = arith.constant 0 : index
    %c0_24 = arith.constant 0 : index
    %c0_25 = arith.constant 0 : index
    %37 = vector.load %arg9[%c0_23, %c0_24, %c0_25] : memref<1x4x256xf32, #tpu.memory_space<vmem>>, vector<1x4x256xf32>
    tpu.vector_store %arg9[%c0_23, %c0_24, %c0_25], %36 {strides = array<i32>} : memref<1x4x256xf32, #tpu.memory_space<vmem>>, vector<1x4x256xf32>,
    %c0_i32_26 = arith.constant 0 : i32
    %38 = arith.cmpi eq, %arg1, %c0_i32_26 : i32
    %39 = arith.extui %38 : i1 to i32
    %c0_i32_27 = arith.constant 0 : i32
    %40 = arith.cmpi ne, %39, %c0_i32_27 : i32
    scf.if %40 {
      %c0_28 = arith.constant 0 : index
      %c0_29 = arith.constant 0 : index
      %c0_30 = arith.constant 0 : index
      %41 = vector.load %arg7[%c0_28, %c0_29, %c0_30] : memref<1x1x256xf32, #tpu.memory_space<vmem>>, vector<1x1x256xf32>
      %cst_31 = arith.constant dense<0.000000e+00> : vector<1x1xf32>
      %42 = vector.multi_reduction <add>, %41, %cst_31 [2] : vector<1x1x256xf32> to vector<1x1xf32>
      %43 = vector.shape_cast %42 : vector<1x1xf32> to vector<1x1x1xf32>
      %c0_32 = arith.constant 0 : index
      %c0_33 = arith.constant 0 : index
      %c0_34 = arith.constant 0 : index
      %44 = vector.load %arg4[%c0_32, %c0_33, %c0_34] : memref<1x1x1xf32, #tpu.memory_space<vmem>>, vector<1x1x1xf32>
      tpu.vector_store %arg4[%c0_32, %c0_33, %c0_34], %43 {strides = array<i32>} : memref<1x1x1xf32, #tpu.memory_space<vmem>>, vector<1x1x1xf32>,
      %c0_35 = arith.constant 0 : index
      %c0_36 = arith.constant 0 : index
      %c0_37 = arith.constant 0 : index
      %45 = vector.load %arg8[%c0_35, %c0_36, %c0_37] : memref<1x4x256xf32, #tpu.memory_space<vmem>>, vector<1x4x256xf32>
      %cst_38 = arith.constant dense<0.000000e+00> : vector<1x4xf32>
      %46 = vector.multi_reduction <add>, %45, %cst_38 [2] : vector<1x4x256xf32> to vector<1x4xf32>
      %47 = vector.shape_cast %46 : vector<1x4xf32> to vector<1x4x1xf32>
      %c0_39 = arith.constant 0 : index
      %c0_40 = arith.constant 0 : index
      %c0_41 = arith.constant 0 : index
      %48 = vector.load %arg5[%c0_39, %c0_40, %c0_41] : memref<1x4x1xf32, #tpu.memory_space<vmem>>, vector<1x4x1xf32>
      tpu.vector_store %arg5[%c0_39, %c0_40, %c0_41], %47 {strides = array<i32>} : memref<1x4x1xf32, #tpu.memory_space<vmem>>, vector<1x4x1xf32>,
      %c0_42 = arith.constant 0 : index
      %c0_43 = arith.constant 0 : index
      %c0_44 = arith.constant 0 : index
      %49 = vector.load %arg9[%c0_42, %c0_43, %c0_44] : memref<1x4x256xf32, #tpu.memory_space<vmem>>, vector<1x4x256xf32>
      %cst_45 = arith.constant dense<0.000000e+00> : vector<1x4xf32>
      %50 = vector.multi_reduction <add>, %49, %cst_45 [2] : vector<1x4x256xf32> to vector<1x4xf32>
      %51 = vector.shape_cast %50 : vector<1x4xf32> to vector<1x4x1xf32>
      %c0_46 = arith.constant 0 : index
      %c0_47 = arith.constant 0 : index
      %c0_48 = arith.constant 0 : index
      %52 = vector.load %arg6[%c0_46, %c0_47, %c0_48] : memref<1x4x1xf32, #tpu.memory_space<vmem>>, vector<1x4x1xf32>
      tpu.vector_store %arg6[%c0_46, %c0_47, %c0_48], %51 {strides = array<i32>} : memref<1x4x1xf32, #tpu.memory_space<vmem>>, vector<1x4x1xf32>,
    } else {
    }
    return
  }
  func.func @transform_0(%arg0: i32, %arg1: i32) -> (i32, i32, i32) {
    %c0_i32 = arith.constant 0 : i32
    %c0_i32_0 = arith.constant 0 : i32
    return %arg0, %c0_i32, %arg1 : i32, i32, i32
  }
  func.func @transform_1(%arg0: i32, %arg1: i32) -> (i32, i32, i32) {
    %c0_i32 = arith.constant 0 : i32
    %c0_i32_0 = arith.constant 0 : i32
    return %arg0, %c0_i32, %arg1 : i32, i32, i32
  }
  func.func @transform_2(%arg0: i32, %arg1: i32) -> (i32, i32, i32) {
    %c0_i32 = arith.constant 0 : i32
    %c0_i32_0 = arith.constant 0 : i32
    %c0_i32_1 = arith.constant 0 : i32
    return %arg0, %c0_i32, %c0_i32_0 : i32, i32, i32
  }
  func.func @transform_3(%arg0: i32, %arg1: i32) -> (i32, i32, i32) {
    %c0_i32 = arith.constant 0 : i32
    %c0_i32_0 = arith.constant 0 : i32
    %c0_i32_1 = arith.constant 0 : i32
    return %arg0, %c0_i32, %c0_i32_0 : i32, i32, i32
  }
  func.func @transform_4(%arg0: i32, %arg1: i32) -> (i32, i32, i32) {
    %c0_i32 = arith.constant 0 : i32
    %c0_i32_0 = arith.constant 0 : i32
    %c0_i32_1 = arith.constant 0 : i32
    return %arg0, %c0_i32, %c0_i32_0 : i32, i32, i32
  }
}

</mosaic_0001>

<bundles_post_ra>
// kernel: tpu_custom_call.1
= control target key start
LH: loop header
LB: loop body
LE: loop exit
PB: predicated region body
PF: predicated region fallthrough
CT: control target
= control target key end

     0   :  { %10 = vsyncpa [#allocation6], 0  ;;  %s1047_s0 = inlined_call_operand.hbm [shape: f32[2,4,256], index: 0, kind: input, shape index: {}]   ;;  %s1048_s1 = inlined_call_operand.hbm [shape: s32[2,1,256], index: 1, kind: input, shape index: {}]   ;;  %s1049_s2 = inlined_call_operand.vmem [shape: f32[2,1,1], index: 2, kind: output, shape index: {0}]   ;;  %s1050_s3 = inlined_call_operand.vmem [shape: f32[2,4,1], index: 3, kind: output, shape index: {1}]   ;;  %s1051_s4 = inlined_call_operand.vmem [shape: f32[2,4,1], index: 4, kind: output, shape index: {2}]  }
   0x1   :  { %12 = vsyncpa [#allocation6 + $0x1], 0 }
   0x2   :  { %13 = vsyncpa [#allocation8], 0 }
   0x3   :  { %15 = vsyncpa [#allocation8 + $0x1], 0  ;;  %s875_s15 = smov 0   ;;  %s877_s16 = smov 0  }
   0x4   :  { %s879_s17 = smov 0   ;;  %s881_s18 = smov 0  }
   0x5   :  { %s883_s19 = smov 0   ;;  %s885_s20 = smov 0  }
   0x6 LB: > { %s638_s21 = sadd.s32 4294967295, %s844_s20   ;;  %s33_s22 = sadd.s32 1, %s840_s19  ;;  %s844_s20 = sphi %s885_s20, %s21_s20   ;;  %s840_s19 = sphi %s883_s19, %s1062_s19   ;;  %s836_s18 = sphi %s881_s18, %s1061_s18   ;;  %s832_s17 = sphi %s879_s17, %s1060_s17   ;;  %s828_s16 = sphi %s877_s16, %s1059_s16   ;;  %s824_s15 = sphi %s875_s15, %s1058_s15  }
   0x7   : > { %p35_p0 = scmp.ge.s32.totalorder %s33_s22, 2  ;;  %s42_s23 = sadd.s32 1, %s832_s17 }
   0x8   : > { %p49_p1 = scmp.ne.s32.totalorder %s832_s17, %s828_s16  ;;  %p50_p2 = scmp.eq.s32.totalorder %s844_s20, 0 }
   0x9   : > { %s1064_s22 = smov (%p35_p0, %s33_s22), 0  ;;  %p55_p4 = scmp.ne.s32.totalorder %s828_s16, %s824_s15 }
   0xa   : > { %p911_p3 = por %p50_p2, %p49_p1  ;;  %s37_s25 = ssub.s32 %s840_s19, %s1064_s22 }
   0xb   : > { %p56_p5 = scmp.eq.s32.totalorder %s638_s21, 0  ;;  %p40_p6 = scmp.eq.s32.totalorder %s37_s25, 0 }
   0xc   : > { %p670_p8 = scmp.lt.s32.totalorder %s844_s20, 2  ;;  %s927_s28 = sand.u32 1, %s832_s17  }
   0xd   : > { %p918_p7 = por %p56_p5, %p55_p4  ;;  %s657_s29 = sshll.u32 %s840_s19, 7 }
   0xe   : > { %s924_s27 = scalar_select %p40_p6, %s832_s17, %s42_s23  }
   0xf   : > { %s642_s30 = sshll.u32 %s927_s28, 3  ;;  %s197_s7 = scalar_lea.hbm %s1047_s0, %s657_s29 }
  0x10   : > { %s189_s8 = scalar_lea.vmem [#allocation5], %s642_s30  ;;  %p936_p9 = pnand %p670_p8, %p911_p3 }
  0x11   : > { %s199_s9 = sshll.u32 %s189_s8, 4  ;;  %p648_p10 = scmp.ge.s32.totalorder %s844_s20, 1  ;;  %s200_s9 = int_to_ptr.vmem [resolvable:$true] %s199_s9 }
  0x12   : > { %p225_p11 = scmp.lt.s32.totalorder %s844_s20, 3  ;;  %s186_s11 = scalar_lea.sflag [#allocation6], %s927_s28 }
  0x13   : > { %p736_p12 = pneg %p936_p9  ;;  %s747_s12 = scalar_lea.vmem %s200_s9, 128 }
  0x14   : > { %p748_p13 = scmp.ne.s32.totalorder %s200_s9, %s747_s12  ;;  %s846_s13 = smov [#allocation5]  }
  0x15   : > { %s752_s14 = sshll.u32 %s846_s13, 4  ;;  %s753_s14 = int_to_ptr.vmem [resolvable:$false] %s752_s14 }
  0x16   : > { %p750_p0 = pnand %p748_p13, %p736_p12  ;;  %s754_s15 = scalar_lea.vmem %s753_s14, 256 }
  0x17   : > { %p755_p2 = scmp.lt.s32.totalorder %s200_s9, %s753_s14  ;;  %p756_p3 = scmp.lt.s32.totalorder %s754_s15, %s747_s12 }
  0x18   : > { %p751_p1 = pneg %p750_p0 }
  0x19   : > { %p757_p4 = por %p756_p3, %p755_p2 }
  0x1b   : > { %p758_p5 = pnand %p757_p4, %p751_p1 }
  0x1d   : > { %761 = shalt.err (!%p758_p5)
}
  0x1e   : > { %666 = dma.hbm_to_vmem [thread:$0]  (!%p936_p9), %s197_s7, 128, %s200_s9, %s186_s11  }
  0x1f   : > { %p954_p6 = pnand %p648_p10, %p225_p11  ;;  %s645_s23 = sshll.u32 %s927_s28, 1 }
  0x20   : > { %s658_s24 = sshll.u32 %s840_s19, 5  ;;  %s210_s5 = scalar_lea.vmem [#allocation7], %s645_s23 }
  0x21   : > { %s218_s30 = scalar_lea.hbm %s1048_s1, %s658_s24  ;;  %s220_s6 = sshll.u32 %s210_s5, 4  ;;  %s221_s6 = int_to_ptr.vmem [resolvable:$true] %s220_s6 }
  0x22   : > { %s207_s8 = scalar_lea.sflag [#allocation8], %s927_s28  ;;  %s775_s12 = scalar_lea.vmem %s221_s6, 32 }
  0x23   : > { %p776_p8 = scmp.ne.s32.totalorder %s221_s6, %s775_s12  ;;  %s847_s7 = smov [#allocation7]  }
  0x24   : > { %s780_s9 = sshll.u32 %s847_s7, 4  ;;  %s781_s9 = int_to_ptr.vmem [resolvable:$false] %s780_s9 }
  0x25   : > { %p778_p13 = pnand %p776_p8, %p736_p12  ;;  %s782_s11 = scalar_lea.vmem %s781_s9, 64 }
  0x26   : > { %p783_p10 = scmp.lt.s32.totalorder %s221_s6, %s781_s9  ;;  %p784_p11 = scmp.lt.s32.totalorder %s782_s11, %s775_s12 }
  0x27   : > { %p779_p0 = pneg %p778_p13 }
  0x28   : > { %p785_p1 = por %p784_p11, %p783_p10 }
  0x2a   : > { %p786_p2 = pnand %p785_p1, %p779_p0 }
  0x2c   : > { %789 = shalt.err (!%p786_p2)
}
  0x2d   : > { %669 = dma.hbm_to_vmem [thread:$0]  (!%p936_p9), %s218_s30, 32, %s221_s6, %s207_s8  }
  0x2e   : > { %229 = sbr.rel (%p954_p6) target bundleno = 290 (0x122), region = 28  ;;  %s231_s28 = sand.u32 (!%p954_p6), 1, %s828_s16  }
  0x2f   : > { %s649_s13 = sshll.u32 (!%p954_p6), %s231_s28, 3  ;;  %s232_s14 = scalar_lea.sflag (!%p954_p6), [#allocation6], %s231_s28 }
  0x30   : > { %s235_s15 = scalar_lea.vmem (!%p954_p6), [#allocation5], %s649_s13 }
  0x33   : > { %815 = dma.done.wait (%p918_p7), %s232_s14, 128  }
  0x34   : > { %817 = vsyncadd (%p918_p7), %s232_s14, 4294967168  ;;  %s650_s23 = sshll.u32 %s231_s28, 1  ;;  %s241_s24 = scalar_lea.sflag [#allocation8], %s231_s28 }
  0x35   : > { %s244_s25 = scalar_lea.vmem [#allocation7], %s650_s23 }
  0x36   : > { %819 = dma.done.wait (%p918_p7), %s241_s24, 32  }
  0x37   : > { %821 = vsyncadd (%p918_p7), %s241_s24, 4294967264  ;;  %v297_v0 = vlaneseq  ;;  %v848_v2 = vmov 0.0   ;;  %vm309_vm1 = vcmask 1043456   ;;  %v304_v3 = vld [vmem:[%s235_s15] sm:$0xff]  ;;  %v305_v23 = vld [vmem:[%s244_s25] sm:$0x3] }
  0x38   : > { %v307_v4 = vcombine.high %v304_v3, %v304_v3  ;;  %v310_v5 = vsel %vm309_vm1, %v304_v3, -inf  ;;  %v849_v61 = vmov 1966171168   ;;  %vm451_vm4 = vcmask 1040384   ;;  %p282_p7 = scmp.lt.s32.totalorder %s836_s18, 1 }
  0x39   : > { %vm980_vm0 = vcmp.lt.s32.totalorder %v297_v0, 256  ;;  %v311_v6 = vrot.slane %v310_v5, 4  ;;  %v988_v18 = vshrl.u32 %v297_v0, 7  ;;  %v399_v62 = vunpack.c.l.s4 %v849_v61 }
  0x3a   : > { %301 = vst.msk [vmem:[#allocation2] sm:$0x3] %vm980_vm0, %v848_v2  ;;  %v317_v7 = vsel %vm309_vm1, %v307_v4, -inf  ;;  %s1066_s18 = smov (!%p282_p7, %s836_s18), 1  ;;  %vm457_vm5 = vcmask 0   ;;  %vm468_vm6 = vcmask 3072  }
  0x3b   : > { %v312_v8 = vmax.f32 %v310_v5, %v311_v6  ;;  %v318_v9 = vrot.slane %v317_v7, 4  ;;  %v358_v21 = vsub.s32 0, %v988_v18  ;;  %v362_v22 = vsub.s32 1, %v988_v18  ;;  %s651_s26 = sshll.u32 %s1066_s18, 2  ;;  %s284_s29 = scalar_lea.vmem %s1049_s2, %s1066_s18 }
  0x3c   : > { %s292_s6 = scalar_lea.vmem %s1051_s4, %s651_s26  ;;  %s288_s7 = scalar_lea.vmem %s1050_s3, %s651_s26 }
  0x3d   : > { %v313_v10 = vrot.slane %v312_v8, 2  ;;  %v319_v11 = vmax.f32 %v317_v7, %v318_v9  ;;  %v359_v26 = vrot.slane %v305_v23, %v358_v21  ;;  %v363_v27 = vrot.slane %v305_v23, %v362_v22 }
  0x3e   : > { %v400_v9 = vunpack.c.0.s8 %v399_v62 }
  0x3f   : > { %v314_v12 = vmax.f32 %v312_v8, %v313_v10  ;;  %v320_v13 = vrot.slane %v319_v11, 2  ;;  %vm364_vm2 = vcmp.eq.s32.totalorder %v988_v18, %v359_v26  ;;  %vm365_vm3 = vcmp.eq.s32.totalorder %v988_v18, %v363_v27 }
  0x40   : > { %v653_v28 = vsel %vm364_vm2, 1.0, %v848_v2  ;;  %v654_v29 = vsel %vm365_vm3, 1.0, %v848_v2 }
  0x41   : > { %v315_v14 = vrot.slane %v314_v12, 1  ;;  %v321_v15 = vmax.f32 %v319_v11, %v320_v13  ;;  %v998_v30 = vcombine.low %v653_v28, %v654_v29 }
  0x43   : > { %v316_v16 = vmax.f32 %v314_v12, %v315_v14  ;;  %v322_v17 = vrot.slane %v321_v15, 1  ;;  %v374_v31 = vmul.f32 %v998_v30, %v304_v3 }
  0x45   : > { %v323_v19 = vmax.f32 %v321_v15, %v322_v17  ;;  %v376_v37 = vcombine.high %v374_v31, %v374_v31  ;;  %v378_v40 = vsel %vm309_vm1, %v374_v31, 0.0  ;;  %v403_v15 = vsub.s32 %v400_v9, %v988_v18 }
  0x46   : > { %v379_v46 = vrot.slane %v378_v40, 4 }
  0x47   : > { %v326_v20 = vcombine.low %v316_v16, %v323_v19  ;;  %v385_v43 = vsel %vm309_vm1, %v376_v37, 0.0 }
  0x48   : > { %v386_v49 = vrot.slane %v385_v43, 4  ;;  %v380_v52 = vadd.f32 %v379_v46, %v378_v40 }
  0x49   : > { %v328_v24 = vsub.f32 %v304_v3, %v326_v20 }
  0x4a   : > { %v387_v54 = vadd.f32 %v386_v49, %v385_v43  ;;  %v381_v55 = vrot.slane %v380_v52, 2 }
  0x4b   : > { %v329_v25 = vmul.f32 1.442695, %v328_v24  ;;  %v392_v24 = vld [vmem:[#allocation2] sm:$0x3] }
  0x4c   : > { %v388_v56 = vrot.slane %v387_v54, 2  ;;  %v382_v57 = vadd.f32 %v381_v55, %v380_v52 }
  0x4d   : > { %722 = vpow2.f32 %v329_v25 }
  0x4e   : > { %v389_v58 = vadd.f32 %v388_v56, %v387_v54  ;;  %v383_v59 = vrot.slane %v382_v57, 1 }
  0x50   : > { %v390_v60 = vrot.slane %v389_v58, 1  ;;  %v384_v3 = vadd.f32 %v383_v59, %v382_v57 }
  0x52   : > { %v391_v8 = vadd.f32 %v390_v60, %v389_v58 }
  0x5a   : > { %v723_v32 = vpop.eup %722 }
  0x5b   : > { %v332_v33 = vcombine.high %v723_v32, %v723_v32  ;;  %v334_v34 = vsel %vm309_vm1, %v723_v32, 0.0 }
  0x5c   : > { %v335_v35 = vrot.slane %v334_v34, 4 }
  0x5d   : > { %v341_v36 = vsel %vm309_vm1, %v332_v33, 0.0 }
  0x5e   : > { %v336_v38 = vadd.f32 %v335_v35, %v334_v34  ;;  %v342_v39 = vrot.slane %v341_v36, 4 }
  0x60   : > { %v337_v41 = vrot.slane %v336_v38, 2  ;;  %v343_v42 = vadd.f32 %v342_v39, %v341_v36 }
  0x62   : > { %v338_v44 = vadd.f32 %v337_v41, %v336_v38  ;;  %v344_v45 = vrot.slane %v343_v42, 2 }
  0x64   : > { %v339_v47 = vrot.slane %v338_v44, 1  ;;  %v345_v48 = vadd.f32 %v344_v45, %v343_v42 }
  0x66   : > { %v340_v50 = vadd.f32 %v339_v47, %v338_v44  ;;  %v346_v51 = vrot.slane %v345_v48, 1 }
  0x68   : > { %v347_v53 = vadd.f32 %v346_v51, %v345_v48  ;;  %724 = vlog2.f32 %v340_v50 }
  0x69   : > { %726 = vrcp.f32 %v340_v50 }
  0x6a   : > { %728 = vlog2.f32 %v347_v53 }
  0x6b   : > { %730 = vrcp.f32 %v347_v53 }
  0x75   : > { %v725_v63 = vpop.eup %724 }
  0x76   : > { %v727_v0 = vpop.eup %726  ;;  %v349_v2 = vmul.f32 0.6931472, %v725_v63 }
  0x77   : > { %v729_v4 = vpop.eup %728 }
  0x78   : > { %v731_v5 = vpop.eup %730  ;;  %v351_v6 = vmul.f32 0.6931472, %v729_v4  ;;  %v352_v7 = vadd.f32 %v349_v2, %v316_v16 }
  0x79   : > { %v423_v10 = vcombine.low %v727_v0, %v731_v5 }
  0x7a   : > { %v353_v11 = vadd.f32 %v351_v6, %v323_v19  ;;  %v393_v12 = vsub.f32 %v352_v7, %v384_v3 }
  0x7b   : > { %v425_v13 = vmul.f32 %v723_v32, %v423_v10 }
  0x7c   : > { %v394_v14 = vsub.f32 %v353_v11, %v391_v8 }
  0x7d   : > { %v426_v17 = vmul.f32 1.442695, %v425_v13 }
  0x7e   : > { %v397_v20 = vcombine.low %v393_v12, %v394_v14 }
  0x7f   : > { %732 = vpow2.f32 %v426_v17 }
  0x80   : > { %v404_v23 = vrot.slane %v397_v20, %v403_v15 }
  0x82   : > { %v411_v25 = vrot.slane %v404_v23, %v403_v15 }
  0x84   : > { %v413_v26 = vadd.f32 %v411_v25, %v392_v24 }
  0x86   : > { %418 = vst.msk [vmem:[#allocation2] sm:$0x3] %vm980_vm0, %v413_v26 }
  0x8c   : > { %v733_v16 = vpop.eup %732 }
  0x8d   : > { %v439_v27 = vld [vmem:[#allocation2] sm:$0x3]  ;;  %v433_v19 = vadd.f32 %v733_v16, %v998_v30  ;;  %v429_v28 = vmul.f32 %v733_v16, %v998_v30 }
  0x8e   : > { %v444_v29 = vrot.slane %v439_v27, %v358_v21  ;;  %v448_v31 = vrot.slane %v439_v27, %v362_v22 }
  0x8f   : > { %v472_v32 = vcombine.high %v433_v19, %v433_v19  ;;  %v474_v33 = vsel %vm309_vm1, %v433_v19, 0.0  ;;  %v461_v1 = vcombine.high %v429_v28, %v429_v28  ;;  %v463_v36 = vsel %vm309_vm1, %v429_v28, 0.0 }
  0x90   : > { %v452_v34 = vsel %vm451_vm4, %v444_v29, 0.0  ;;  %v453_v35 = vsel %vm451_vm4, %v448_v31, 0.0 }
  0x91   : > { %v454_v37 = vadd.f32 %v453_v35, %v452_v34  ;;  %v475_v38 = vsel %vm309_vm1, %v472_v32, 0.0  ;;  %v464_v30 = vsel %vm309_vm1, %v461_v1, 0.0 }
  0x92   : > { %v476_v39 = vadd.f32 %v475_v38, %v474_v33  ;;  %v465_v21 = vadd.f32 %v464_v30, %v463_v36 }
  0x93   : > { %455 = vadd.xlane.f32.xlu0 %v454_v37 }
  0x94   : > { %477 = vadd.xlane.f32.xlu1 %v476_v39 }
  0x97   : > { %466 = vadd.xlane.f32.xlu0 %v465_v21 }
 0x11c   : > { %v456_v18 = vpop.xlane.xlu0 %455 }
 0x11d   : > { %458 = vst.msk [vmem:[%s284_s29] sm:$0x1] %vm457_vm5, %v456_v18  ;;  %v478_v22 = vpop.xlane.xlu1 %477 }
 0x11e   : > { %479 = vst.msk [vmem:[%s292_s6] sm:$0xf] %vm468_vm6, %v478_v22 }
 0x120   : > { %v467_v40 = vpop.xlane.xlu0 %466 }
 0x121   : > { %469 = vst.msk [vmem:[%s288_s7] sm:$0xf] %vm468_vm6, %v467_v40 }
 0x122 PF: > { %s21_s20 = sadd.s32 1, %s844_s20   ;;  %s1058_s15 = smov %s828_s16 }
 0x123   : > { %p18_p9 = scmp.ge.s32.totalorder %s21_s20, 4   ;;  %s1059_s16 = smov %s832_s17 }
 0x124   : > { %s1060_s17 = smov %s924_s27  ;;  %s1061_s18 = smov %s840_s19 }
 0x125   : > { %s1062_s19 = smov %s1064_s22  ;;  %20 = sbr.rel (!%p18_p9) target bundleno = 6 (0x6), region = 113 }
 0x12a   :  { %525 = vsyncpa [#allocation6], 1 }
 0x12b   :  { %527 = vsyncpa [#allocation6 + $0x1], 1 }
 0x12c   :  { %528 = vsyncpa [#allocation8], 1 }
 0x12d   :  { %530 = vsyncpa [#allocation8 + $0x1], 1 }

</bundles_post_ra>
